<compile_context>
chip_gen: v7x
topology: tpu7x:2x2x1
jax: 0.10.0
libtpu: 0.0.40
codegen_flags: <defaults>
</compile_context>

<pallas_src>
import functools

import jax
import jax.numpy as jnp
from jax import lax
from jax.experimental import pallas as pl
from jax.experimental.pallas import tpu as pltpu

# Module hyper-parameter defaults (FocalCosineLoss.__init__)
ALPHA = 1.0
GAMMA = 2.0
XENT = 0.1
COS_EPS = 1e-8    # ATen cosine_embedding_loss EPSILON (added to each squared norm)
NORM_EPS = 1e-12  # torch.nn.functional.normalize default eps


def focal_cosine_kernel(tgt_ref, logits_ref, out_ref, *, n_valid, alpha, gamma, xent):
    i = pl.program_id(0)

    @pl.when(i == 0)
    def _init():
        out_ref[...] = jnp.zeros_like(out_ref)

    logits = logits_ref[...].astype(jnp.float32)         # (TB, C)
    tgt = tgt_ref[...]                                   # (TB, 1) int32
    tb, c = logits.shape

    col = lax.broadcasted_iota(jnp.int32, (tb, c), 1)

    # dot = <logits, onehot(target)> via vselect (no float one-hot materialized)
    dot = jnp.sum(jnp.where(col == tgt, logits, 0.0), axis=-1, keepdims=True)   # (TB,1)
    sq = jnp.sum(logits * logits, axis=-1, keepdims=True)                       # (TB,1)

    # --- cosine embedding loss term (y = +1, ||onehot|| = 1) ------------------
    # ATen adds EPSILON to each squared magnitude before the sqrt.
    cos = dot * lax.rsqrt((sq + COS_EPS) * (1.0 + COS_EPS))
    cos_loss = 1.0 - cos                                                        # (TB,1)

    # --- focal loss on cross-entropy of L2-normalized logits ------------------
    # F.normalize: x / max(||x||, eps)  ==  x * rsqrt(max(||x||^2, eps^2))
    inv_norm = lax.rsqrt(jnp.maximum(sq, NORM_EPS * NORM_EPS))                  # (TB,1)
    n = logits * inv_norm                                                       # (TB,C)
    m = jnp.max(n, axis=-1, keepdims=True)
    lse = m + jnp.log(jnp.sum(jnp.exp(n - m), axis=-1, keepdims=True))
    n_t = dot * inv_norm          # == sum(n * onehot): no second masked reduction
    cent = lse - n_t                                                            # (TB,1)
    pt = jnp.exp(-cent)
    one_minus_pt = 1.0 - pt
    if gamma == 2.0:              # default: explicit square, avoids exp/log pow path
        focal_w = one_minus_pt * one_minus_pt
    elif gamma == 1.0:
        focal_w = one_minus_pt
    else:
        focal_w = one_minus_pt ** gamma
    focal = alpha * focal_w * cent

    per_row = cos_loss + xent * focal                                           # (TB,1)

    # mask out padded rows of the (possibly partial) last tile
    row = i * tb + lax.broadcasted_iota(jnp.int32, (tb, 1), 0)
    per_row = jnp.where(row < n_valid, per_row, 0.0)

    out_ref[...] += jnp.sum(per_row, keepdims=True)

    @pl.when(i == pl.num_programs(0) - 1)
    def _finalize():
        out_ref[...] = out_ref[...] * (1.0 / n_valid)    # reduction == 'mean'


def _choose_block_b(batch, num_classes, itemsize):
    """Rows per tile: ~2 MiB per logits block (double-buffered by BlockSpec),
    capped at 1024 rows; conservative enough for v5e's 16 MiB / v7x's 32 MiB
    default scoped VMEM while staying large enough to amortize grid-step cost."""
    rows = (2 * 1024 * 1024) // max(num_classes * itemsize, 1)
    rows = max(8, min(1024, rows))
    rows = (rows // 8) * 8
    b_pad8 = ((batch + 7) // 8) * 8
    return min(rows, b_pad8)


def focal_cosine_loss(logits, target, *, alpha=ALPHA, gamma=GAMMA, xent=XENT):
    """logits: (B, C) float (any dtype), target: (B,) int class indices -> scalar loss."""
    B, C = logits.shape
    tb = _choose_block_b(B, C, jnp.dtype(logits.dtype).itemsize)
    b_pad = pl.cdiv(B, tb) * tb

    if b_pad != B:
        logits = jnp.pad(logits, ((0, b_pad - B), (0, 0)))
        target = jnp.pad(target, (0, b_pad - B))
    tgt2d = target.astype(jnp.int32).reshape(b_pad, 1)

    kernel = functools.partial(
        focal_cosine_kernel,
        n_valid=B, alpha=float(alpha), gamma=float(gamma), xent=float(xent),
    )

    out = pl.pallas_call(
        kernel,
        out_shape=jax.ShapeDtypeStruct((1, 1), jnp.float32),
        grid=(b_pad // tb,),
        in_specs=[
            pl.BlockSpec((tb, 1), lambda i: (i, 0)),   # target (int32)
            pl.BlockSpec((tb, C), lambda i: (i, 0)),   # logits, native dtype
        ],
        out_specs=pl.BlockSpec((1, 1), lambda i: (0, 0)),   # resident accumulator
        compiler_params=pltpu.CompilerParams(
            dimension_semantics=("arbitrary",),   # reduction into one output block
        ),
    )(tgt2d, logits)
    return out[0, 0]


def _reference(logits, target):
    """Pure-JAX reference mirroring the PyTorch forward."""
    logits = logits.astype(jnp.float32)
    C = logits.shape[-1]
    onehot = jax.nn.one_hot(target, C, dtype=jnp.float32)
    dot = jnp.sum(logits * onehot, axis=-1)
    sq = jnp.sum(logits * logits, axis=-1)
    cos = dot / jnp.sqrt((sq + COS_EPS) * (1.0 + COS_EPS))
    cosine_loss = jnp.mean(1.0 - cos)
    n = logits / jnp.maximum(jnp.sqrt(sq)[:, None], NORM_EPS)
    lse = jax.scipy.special.logsumexp(n, axis=-1)
    cent = lse - jnp.take_along_axis(n, target[:, None], axis=-1)[:, 0]
    pt = jnp.exp(-cent)
    focal = ALPHA * (1.0 - pt) ** GAMMA * cent
    return cosine_loss + XENT * jnp.mean(focal)


if __name__ == "__main__":
    key = jax.random.PRNGKey(0)
    k_logits, k_target = jax.random.split(key)

    # Small shapes consistent with the module: batch=8, num_classes=32.
    B, C = 8, 32
    logits = jax.random.normal(k_logits, (B, C), dtype=jnp.float32)
    target = jax.random.randint(k_target, (B,), 0, C, dtype=jnp.int32)

    loss = focal_cosine_loss(logits, target)
    jax.block_until_ready(loss)
    ref = _reference(logits, target)
    assert jnp.allclose(loss, ref, rtol=2e-5, atol=1e-6), (loss, ref)

    # Also exercise the partial-tile mask path (batch not a multiple of 8).
    B2 = 13
    logits2 = jax.random.normal(k_logits, (B2, C), dtype=jnp.float32)
    target2 = jax.random.randint(k_target, (B2,), 0, C, dtype=jnp.int32)
    loss2 = focal_cosine_loss(logits2, target2)
    jax.block_until_ready(loss2)
    ref2 = _reference(logits2, target2)
    assert jnp.allclose(loss2, ref2, rtol=2e-5, atol=1e-6), (loss2, ref2)

    print("KERNEL_OK")
</pallas_src>

<mosaic_0001>
module attributes {stable_mosaic.version = 11 : i64} {
  func.func @focal_cosine_kernel(%arg0: i32, %arg1: memref<8x1xi32, #tpu.memory_space<vmem>>, %arg2: memref<8x32xf32, #tpu.memory_space<vmem>>, %arg3: memref<1x1xf32, #tpu.memory_space<vmem>>) attributes {dimension_semantics = [#tpu.dimension_semantics<arbitrary>], iteration_bounds = array<i64: 1>, scalar_prefetch = 0 : i64, scratch_operands = 0 : i64, tpu.core_type = #tpu.core_type<tc>, window_params = [{transform_indices = @transform_0, window_bounds = array<i64: 8, 1>}, {transform_indices = @transform_1, window_bounds = array<i64: 8, 32>}, {pipeline_mode = #tpu.pipeline_mode<synchronous>, transform_indices = @transform_2, window_bounds = array<i64: 1, 1>}]} {
    %c0_i32 = arith.constant 0 : i32
    %0 = arith.cmpi eq, %arg0, %c0_i32 : i32
    %1 = arith.extui %0 : i1 to i32
    %c0_i32_0 = arith.constant 0 : i32
    %2 = arith.cmpi ne, %1, %c0_i32_0 : i32
    scf.if %2 {
      %cst_25 = arith.constant 0.000000e+00 : f32
      %70 = vector.broadcast %cst_25 : f32 to vector<1x1xf32>
      %c0_26 = arith.constant 0 : index
      %c0_27 = arith.constant 0 : index
      %71 = vector.load %arg3[%c0_26, %c0_27] : memref<1x1xf32, #tpu.memory_space<vmem>>, vector<1x1xf32>
      tpu.vector_store %arg3[%c0_26, %c0_27], %70 {strides = array<i32>} : memref<1x1xf32, #tpu.memory_space<vmem>>, vector<1x1xf32>,
    } else {
    }
    %c0 = arith.constant 0 : index
    %c0_1 = arith.constant 0 : index
    %3 = vector.load %arg2[%c0, %c0_1] : memref<8x32xf32, #tpu.memory_space<vmem>>, vector<8x32xf32>
    %c0_2 = arith.constant 0 : index
    %c0_3 = arith.constant 0 : index
    %4 = vector.load %arg1[%c0_2, %c0_3] : memref<8x1xi32, #tpu.memory_space<vmem>>, vector<8x1xi32>
    %5 = tpu.iota {dimensions = array<i32: 1>} : vector<8x32xi32>
    %6 = vector.broadcast %4 : vector<8x1xi32> to vector<8x32xi32>
    %7 = arith.cmpi eq, %5, %6 : vector<8x32xi32>
    %cst = arith.constant 0.000000e+00 : f32
    %8 = vector.broadcast %cst : f32 to vector<8x32xf32>
    %9 = arith.select %7, %3, %8 : vector<8x32xi1>, vector<8x32xf32>
    %cst_4 = arith.constant dense<0.000000e+00> : vector<8xf32>
    %10 = vector.multi_reduction <add>, %9, %cst_4 [1] : vector<8x32xf32> to vector<8xf32>
    %11 = vector.shape_cast %10 : vector<8xf32> to vector<8x1xf32>
    %12 = arith.mulf %3, %3 : vector<8x32xf32>
    %cst_5 = arith.constant dense<0.000000e+00> : vector<8xf32>
    %13 = vector.multi_reduction <add>, %12, %cst_5 [1] : vector<8x32xf32> to vector<8xf32>
    %14 = vector.shape_cast %13 : vector<8xf32> to vector<8x1xf32>
    %cst_6 = arith.constant 9.99999993E-9 : f32
    %15 = vector.broadcast %cst_6 : f32 to vector<8x1xf32>
    %16 = arith.addf %14, %15 : vector<8x1xf32>
    %cst_7 = arith.constant 1.000000e+00 : f32
    %17 = vector.broadcast %cst_7 : f32 to vector<8x1xf32>
    %18 = arith.mulf %16, %17 : vector<8x1xf32>
    %19 = math.rsqrt %18 : vector<8x1xf32>
    %20 = arith.mulf %11, %19 : vector<8x1xf32>
    %cst_8 = arith.constant 1.000000e+00 : f32
    %21 = vector.broadcast %cst_8 : f32 to vector<8x1xf32>
    %22 = arith.subf %21, %20 : vector<8x1xf32>
    %cst_9 = arith.constant 1.000000e-24 : f32
    %23 = vector.broadcast %cst_9 : f32 to vector<8x1xf32>
    %24 = arith.maximumf %14, %23 : vector<8x1xf32>
    %25 = math.rsqrt %24 : vector<8x1xf32>
    %26 = vector.broadcast %25 : vector<8x1xf32> to vector<8x32xf32>
    %27 = arith.mulf %3, %26 : vector<8x32xf32>
    %cst_10 = arith.constant dense<0xFF800000> : vector<8xf32>
    %28 = vector.multi_reduction <maximumf>, %27, %cst_10 [1] : vector<8x32xf32> to vector<8xf32>
    %29 = vector.shape_cast %28 : vector<8xf32> to vector<8x1xf32>
    %30 = vector.broadcast %29 : vector<8x1xf32> to vector<8x32xf32>
    %31 = arith.subf %27, %30 : vector<8x32xf32>
    %32 = math.exp %31 : vector<8x32xf32>
    %cst_11 = arith.constant dense<0.000000e+00> : vector<8xf32>
    %33 = vector.multi_reduction <add>, %32, %cst_11 [1] : vector<8x32xf32> to vector<8xf32>
    %34 = vector.shape_cast %33 : vector<8xf32> to vector<8x1xf32>
    %35 = math.log %34 : vector<8x1xf32>
    %36 = arith.addf %29, %35 : vector<8x1xf32>
    %37 = arith.mulf %11, %25 : vector<8x1xf32>
    %38 = arith.subf %36, %37 : vector<8x1xf32>
    %cst_12 = arith.constant 0.000000e+00 : f32
    %39 = vector.broadcast %cst_12 : f32 to vector<8x1xf32>
    %40 = arith.subf %39, %38 : vector<8x1xf32>
    %41 = math.exp %40 : vector<8x1xf32>
    %cst_13 = arith.constant 1.000000e+00 : f32
    %42 = vector.broadcast %cst_13 : f32 to vector<8x1xf32>
    %43 = arith.subf %42, %41 : vector<8x1xf32>
    %44 = arith.mulf %43, %43 : vector<8x1xf32>
    %cst_14 = arith.constant 1.000000e+00 : f32
    %45 = vector.broadcast %cst_14 : f32 to vector<8x1xf32>
    %46 = arith.mulf %45, %44 : vector<8x1xf32>
    %47 = arith.mulf %46, %38 : vector<8x1xf32>
    %cst_15 = arith.constant 1.000000e-01 : f32
    %48 = vector.broadcast %cst_15 : f32 to vector<8x1xf32>
    %49 = arith.mulf %48, %47 : vector<8x1xf32>
    %50 = arith.addf %22, %49 : vector<8x1xf32>
    %c8_i32 = arith.constant 8 : i32
    %51 = arith.muli %arg0, %c8_i32 : i32
    %52 = tpu.iota {dimensions = array<i32: 0>} : vector<8x1xi32>
    %53 = vector.broadcast %51 : i32 to vector<8x1xi32>
    %54 = arith.addi %53, %52 : vector<8x1xi32>
    %c8_i32_16 = arith.constant 8 : i32
    %55 = vector.broadcast %c8_i32_16 : i32 to vector<8x1xi32>
    %56 = arith.cmpi slt, %54, %55 : vector<8x1xi32>
    %cst_17 = arith.constant 0.000000e+00 : f32
    %57 = vector.broadcast %cst_17 : f32 to vector<8x1xf32>
    %58 = arith.select %56, %50, %57 : vector<8x1xi1>, vector<8x1xf32>
    %c0_18 = arith.constant 0 : index
    %c0_19 = arith.constant 0 : index
    %59 = vector.load %arg3[%c0_18, %c0_19] : memref<1x1xf32, #tpu.memory_space<vmem>>, vector<1x1xf32>
    %60 = vector.shape_cast %58 : vector<8x1xf32> to vector<1x8x1xf32>
    %cst_20 = arith.constant dense<0.000000e+00> : vector<1xf32>
    %61 = vector.multi_reduction <add>, %60, %cst_20 [1, 2] : vector<1x8x1xf32> to vector<1xf32>
    %62 = vector.shape_cast %61 : vector<1xf32> to vector<1x1x1xf32>
    %63 = vector.extract %62[0, 0, 0] : f32 from vector<1x1x1xf32>
    %64 = vector.broadcast %63 : f32 to vector<1x1xf32>
    %65 = arith.addf %59, %64 : vector<1x1xf32>
    %c0_21 = arith.constant 0 : index
    %c0_22 = arith.constant 0 : index
    %66 = vector.load %arg3[%c0_21, %c0_22] : memref<1x1xf32, #tpu.memory_space<vmem>>, vector<1x1xf32>
    tpu.vector_store %arg3[%c0_21, %c0_22], %65 {strides = array<i32>} : memref<1x1xf32, #tpu.memory_space<vmem>>, vector<1x1xf32>,
    %c0_i32_23 = arith.constant 0 : i32
    %67 = arith.cmpi eq, %arg0, %c0_i32_23 : i32
    %68 = arith.extui %67 : i1 to i32
    %c0_i32_24 = arith.constant 0 : i32
    %69 = arith.cmpi ne, %68, %c0_i32_24 : i32
    scf.if %69 {
      %c0_25 = arith.constant 0 : index
      %c0_26 = arith.constant 0 : index
      %70 = vector.load %arg3[%c0_25, %c0_26] : memref<1x1xf32, #tpu.memory_space<vmem>>, vector<1x1xf32>
      %cst_27 = arith.constant 1.250000e-01 : f32
      %71 = vector.broadcast %cst_27 : f32 to vector<1x1xf32>
      %72 = arith.mulf %70, %71 : vector<1x1xf32>
      %c0_28 = arith.constant 0 : index
      %c0_29 = arith.constant 0 : index
      %73 = vector.load %arg3[%c0_28, %c0_29] : memref<1x1xf32, #tpu.memory_space<vmem>>, vector<1x1xf32>
      tpu.vector_store %arg3[%c0_28, %c0_29], %72 {strides = array<i32>} : memref<1x1xf32, #tpu.memory_space<vmem>>, vector<1x1xf32>,
    } else {
    }
    return
  }
  func.func @transform_0(%arg0: i32) -> (i32, i32) {
    %c0_i32 = arith.constant 0 : i32
    %c0_i32_0 = arith.constant 0 : i32
    return %arg0, %c0_i32 : i32, i32
  }
  func.func @transform_1(%arg0: i32) -> (i32, i32) {
    %c0_i32 = arith.constant 0 : i32
    %c0_i32_0 = arith.constant 0 : i32
    return %arg0, %c0_i32 : i32, i32
  }
  func.func @transform_2(%arg0: i32) -> (i32, i32) {
    %c0_i32 = arith.constant 0 : i32
    %c0_i32_0 = arith.constant 0 : i32
    %c0_i32_1 = arith.constant 0 : i32
    return %c0_i32, %c0_i32_0 : i32, i32
  }
}

</mosaic_0001>

<bundles_post_ra>
// kernel: tpu_custom_call.1
= control target key start
LH: loop header
LB: loop body
LE: loop exit
PB: predicated region body
PF: predicated region fallthrough
CT: control target
= control target key end

     0   :  { %vm27_vm0 = vcmask 261120   ;;  %s191_s0 = inlined_call_operand.vmem [shape: s32[8,1], index: 0, kind: input, shape index: {}]   ;;  %s192_s1 = inlined_call_operand.vmem [shape: f32[8,32], index: 1, kind: input, shape index: {}]   ;;  %s193_s2 = inlined_call_operand.hbm [shape: f32[1,1], index: 2, kind: output, shape index: {}]  }
   0x1   :  { %v18_v0 = vld [vmem:[%s192_s1] sm:$0xff] }
   0x2   :  { %v19_v1 = vld [vmem:[%s191_s0] sm:$0xff] }
   0x3   :  { %7 = vsyncpa [#allocation3], 0  ;;  %v31_v2 = vmul.f32 %v18_v0, %v18_v0  ;;  %v148_v3 = vmov 0   ;;  %v20_v7 = vlaneseq  ;;  %vm72_vm2 = vcmask 7168   ;;  %s150_s1 = smov [#allocation2]  }
   0x4   :  { %112 = vset.pattern.permute.xlu1 %v148_v3  ;;  %113 = vset.pattern.permute.xlu0 %v148_v3  ;;  %vm16_vm3 = vcmask 0   ;;  %v149_v40 = vmov 0.0   ;;  %s99_s13 = sshll.u32 %s150_s1, 4  ;;  %s100_s13 = int_to_ptr.vmem [resolvable:$true] %s99_s13 }
   0x5   :  { %23 = vperm.xlu1 %112, %v19_v1   ;;  %v32_v4 = vsel %vm27_vm0, %v31_v2, 0.0  ;;  %v21_v8 = vand.u32 127, %v20_v7  ;;  %17 = vst.msk [vmem:[#allocation2] sm:$0x1] %vm16_vm3, %v149_v40  ;;  %s124_s14 = scalar_lea.vmem %s100_s13, 16  ;;  %s128_s15 = scalar_lea.vmem %s100_s13, 32 }
   0x6   :  { %33 = vadd.xlane.f32.xlu0 %v32_v4  ;;  %p125_p0 = scmp.ne.s32.totalorder %s100_s13, %s124_s14  ;;  %p129_p1 = scmp.lt.s32.totalorder %s100_s13, %s100_s13 }
   0x7   :  { %p130_p2 = scmp.lt.s32.totalorder %s128_s15, %s124_s14 }
   0x9   :  { %p131_p3 = por %p130_p2, %p129_p1 }
   0xb   :  { %p132_p4 = pnand %p131_p3, %p125_p0 }
   0xc   :  { %v71_v48 = vld [vmem:[#allocation2] sm:$0x1] }
  0x84   :  { %v24_v9 = vpop.permute.xlu1 %23 }
  0x85   :  { %vm25_vm1 = vcmp.eq.s32.totalorder %v21_v8, %v24_v9 }
  0x86   :  { %v26_v12 = vsel %vm25_vm1, %v18_v0, 0.0 }
  0x87   :  { %v28_v14 = vsel %vm27_vm0, %v26_v12, 0.0 }
  0x93   :  { %v34_v5 = vpop.xlane.xlu0 %33 }
  0x94   :  { %v39_v6 = vmax.f32 %v34_v5, 1e-24  ;;  %v35_v28 = vadd.f32 1e-08, %v34_v5 }
  0x96   :  { %114 = vrsqrt.f32 %v39_v6 }
  0xa0   :  { %v115_v10 = vpop.eup %114 }
  0xa1   :  { %v41_v11 = vmul.f32 %v115_v10, %v18_v0 }
  0xa3   :  { %v42_v13 = vsel %vm27_vm0, %v41_v11, -inf }
  0xa4   :  { %43 = vmax.xlane.f32.xlu0 %v42_v13 }
  0xa8   :  { %29 = vadd.xlane.f32.xlu0 %v28_v14 }
 0x131   :  { %v44_v15 = vpop.xlane.xlu0 %43 }
 0x132   :  { %v45_v16 = vsub.f32 %v41_v11, %v44_v15 }
 0x134   :  { %v46_v17 = vmul.f32 1.442695, %v45_v16 }
 0x135   :  { %v30_v22 = vpop.xlane.xlu0 %29 }
 0x136   :  { %116 = vpow2.f32 %v46_v17  ;;  %v54_v24 = vmul.f32 %v115_v10, %v30_v22 }
 0x140   :  { %v117_v18 = vpop.eup %116 }
 0x141   :  { %v48_v19 = vsel %vm27_vm0, %v117_v18, 0.0 }
 0x142   :  { %49 = vadd.xlane.f32.xlu1 %v48_v19 }
 0x1cf   :  { %v50_v20 = vpop.xlane.xlu1 %49 }
 0x1d0   :  { %118 = vlog2.f32 %v50_v20 }
 0x1da   :  { %v119_v21 = vpop.eup %118 }
 0x1db   :  { %v52_v23 = vmul.f32 0.6931472, %v119_v21 }
 0x1dd   :  { %v53_v25 = vadd.f32 %v52_v23, %v44_v15 }
 0x1df   :  { %v55_v26 = vsub.f32 %v53_v25, %v54_v24 }
 0x1e1   :  { %v56_v27 = vsub.f32 0.0, %v55_v26 }
 0x1e3   :  { %v57_v29 = vmul.f32 1.442695, %v56_v27 }
 0x1e5   :  { %120 = vpow2.f32 %v57_v29 }
 0x1e6   :  { %122 = vrsqrt.f32 %v35_v28 }
 0x1ef   :  { %v121_v30 = vpop.eup %120 }
 0x1f0   :  { %v59_v31 = vsub.f32 1.0, %v121_v30  ;;  %v123_v32 = vpop.eup %122 }
 0x1f1   :  { %v37_v33 = vmul.f32 %v123_v32, %v30_v22 }
 0x1f2   :  { %v60_v34 = vmul.f32 %v59_v31, %v59_v31 }
 0x1f3   :  { %v38_v36 = vsub.f32 1.0, %v37_v33 }
 0x1f4   :  { %v61_v35 = vmul.f32 %v60_v34, %v55_v26 }
 0x1f6   :  { %v62_v37 = vmul.f32 0.1, %v61_v35 }
 0x1f8   :  { %v63_v38 = vadd.f32 %v62_v37, %v38_v36 }
 0x1fa   :  { %v73_v39 = vsel %vm72_vm2, %v63_v38, 0.0 }
 0x1fb   :  { %74 = vadd.xlane.f32.xlu0 %v73_v39 }
 0x288   :  { %v75_v41 = vpop.xlane.xlu0 %74 }
 0x289   :  { %v76_v42 = vrot.slane %v75_v41, 4 }
 0x28b   :  { %v77_v43 = vadd.f32 %v76_v42, %v75_v41 }
 0x28d   :  { %v78_v44 = vrot.slane %v77_v43, 2 }
 0x28f   :  { %v79_v45 = vadd.f32 %v78_v44, %v77_v43 }
 0x291   :  { %v80_v46 = vrot.slane %v79_v45, 1 }
 0x293   :  { %v81_v47 = vadd.f32 %v80_v46, %v79_v45 }
 0x295   :  { %107 = vpush %v81_v47 }
 0x2c6   :  { %s108_s0 = spop %107 }
 0x2c7   :  { %v83_v49 = vstv %s108_s0 }
 0x2c8   :  { %v84_v50 = vadd.f32 %v83_v49, %v71_v48 }
 0x2ca   :  { %86 = vst.msk [vmem:[#allocation2] sm:$0x1] %vm16_vm3, %v84_v50 }
 0x2d1   :  { %v90_v51 = vld [vmem:[#allocation2] sm:$0x1] }
 0x2d2   :  { %v91_v52 = vmul.f32 0.125, %v90_v51 }
 0x2d4   :  { %92 = vst.msk [vmem:[#allocation2] sm:$0x1] %vm16_vm3, %v91_v52 }
 0x2d5   :  { %135 = shalt.err (!%p132_p4)
}
 0x2d6   :  { %s136_s18 = scalar_lea.hbm %s193_s2, 16 }
 0x2d7   :  { %p137_p5 = scmp.ne.s32.totalorder %s193_s2, %s136_s18  ;;  %p140_p6 = scmp.lt.u32.totalorder %s136_s18, %s193_s2 }
 0x2d9   :  { %p142_p7 = pnand %p140_p6, %p137_p5 }
 0x2db   :  { %145 = shalt.err (!%p142_p7)
}
 0x2dc   :  { %102 = dma.vmem_to_hbm [thread:$0]  %s100_s13, 16, %s193_s2, [#allocation3]  }
 0x2dd   :  { %146 = dma.done.wait [#allocation3], 16  }
 0x2de   :  { %147 = vsyncadd [#allocation3], 4294967280 }
 0x2df   :  { %106 = vsyncpa [#allocation3], 1 }

</bundles_post_ra>
